<compile_context>
chip_gen: v7x
topology: tpu7x:2x2x1
jax: 0.10.0
libtpu: 0.0.40
codegen_flags: <defaults>
</compile_context>

<pallas_src>
import jax
import jax.numpy as jnp
from jax.experimental import pallas as pl
from jax.experimental.pallas import tpu as pltpu

LEVELS = 10
IN_FEATURES = LEVELS * 2 + 3   # 23
IN_PAD = 128                   # lane-dense fc1 input width (zero-padded)
HIDDEN = 512
OUT_FEATURES = 5
OUT_PAD = 128                  # lane-dense fc2 output width (zero-padded)
ACT_PAD = 8                    # narrow int32 output width for actions-only path
NEG_SLOPE = 0.01               # nn.LeakyReLU default


def _round_up(n, m):
    return (n + m - 1) // m * m


# ---------------------------------------------------------------------------
# Kernels
# ---------------------------------------------------------------------------
def _mlp_q(x_ref, w1_ref, b1_ref, w2_ref, b2_ref):
    """Shared body: returns f32 q [TB, OUT_PAD] (bf16 operands, f32 accumulate)."""
    h = jnp.dot(x_ref[...], w1_ref[...], preferred_element_type=jnp.float32)
    h = h + b1_ref[...]
    # LeakyReLU: single vmax per vreg.
    h = jnp.maximum(h, NEG_SLOPE * h)
    q = jnp.dot(h.astype(jnp.bfloat16), w2_ref[...],
                preferred_element_type=jnp.float32)
    return q + b2_ref[...]


def _greedy_action(q):
    """First-index argmax over the 5 real Q columns; returns f32 [TB, 1]."""
    col = jax.lax.broadcasted_iota(jnp.int32, q.shape, 1)
    q_m = jnp.where(col < OUT_FEATURES, q, -jnp.inf)
    q_max = jnp.max(q_m, axis=-1, keepdims=True)
    colf = col.astype(jnp.float32)
    return jnp.min(jnp.where(q_m == q_max, colf, float(OUT_PAD)),
                   axis=-1, keepdims=True)


def dql_forward_kernel(x_ref, w1_ref, b1_ref, w2_ref, b2_ref, q_ref):
    q = _mlp_q(x_ref, w1_ref, b1_ref, w2_ref, b2_ref)
    act_f = _greedy_action(q)
    # Fold the greedy action into padded column OUT_FEATURES (exact in f32 for
    # values 0..4) -> single lane-dense output, no second output pipeline.
    col = jax.lax.broadcasted_iota(jnp.int32, q.shape, 1)
    q_ref[...] = jnp.where(col == OUT_FEATURES, act_f, q).astype(q_ref.dtype)


def dql_actions_kernel(x_ref, w1_ref, b1_ref, w2_ref, b2_ref, act_ref):
    """Acting-path variant: skips the 128-lane q writeback entirely."""
    q = _mlp_q(x_ref, w1_ref, b1_ref, w2_ref, b2_ref)
    act_f = _greedy_action(q)
    act_ref[...] = jnp.broadcast_to(act_f.astype(jnp.int32), act_ref.shape)


# ---------------------------------------------------------------------------
# One-time parameter preparation (hoisted out of the per-call wrapper)
# ---------------------------------------------------------------------------
def prepare_params(w1, b1, w2, b2):
    """Pad + cast params for the kernel.  Call ONCE and reuse every forward.

    Inputs are [in, out] float32 (i.e. PyTorch weight transposed).
    """
    w1p = jnp.pad(w1, ((0, IN_PAD - IN_FEATURES), (0, 0))).astype(jnp.bfloat16)
    b1p = jnp.asarray(b1, jnp.float32).reshape(1, HIDDEN)
    w2p = jnp.pad(w2, ((0, 0), (0, OUT_PAD - OUT_FEATURES))).astype(jnp.bfloat16)
    b2p = jnp.pad(jnp.asarray(b2, jnp.float32).reshape(1, OUT_FEATURES),
                  ((0, 0), (0, OUT_PAD - OUT_FEATURES)))
    return w1p, b1p, w2p, b2p


def _prep_x(x):
    """Feature-pad to 128 lanes + bf16.  For hot paths, produce this directly."""
    if x.shape[-1] != IN_PAD:
        x = jnp.pad(x, ((0, 0), (0, IN_PAD - x.shape[-1])))
    return x.astype(jnp.bfloat16)


def _choose_tile(B, block_b):
    # Clamp to a sublane multiple (correctness concern from review).
    block_b = max(8, (block_b // 8) * 8)
    B8 = _round_up(B, 8)
    if B8 > block_b:
        TB = block_b
    elif B8 >= 256:
        # Enough work to split: ensure >= 2 grid steps so the "parallel" batch
        # axis shards across v7x's 2 TensorCores (moot on v5e/v6e).
        TB = _round_up((B8 + 1) // 2, 8)
    else:
        TB = B8
    B_pad = _round_up(B8, TB)
    return TB, B_pad


def _weight_specs():
    return [
        pl.BlockSpec((IN_PAD, HIDDEN), lambda i: (0, 0)),   # w1 VMEM-resident
        pl.BlockSpec((1, HIDDEN), lambda i: (0, 0)),         # b1 resident
        pl.BlockSpec((HIDDEN, OUT_PAD), lambda i: (0, 0)),   # w2 resident
        pl.BlockSpec((1, OUT_PAD), lambda i: (0, 0)),         # b2 resident
    ]


# ---------------------------------------------------------------------------
# Wrappers
# ---------------------------------------------------------------------------
def dql_forward(x, params, *, block_b=1024, return_padded=False):
    """Full forward.  Returns (q_values [B, 5] f32, greedy_actions [B] int32).

    With return_padded=True returns the raw [B_pad, 128] block (q in cols :5,
    action index in col 5) so downstream code can avoid the slice copies.
    """
    w1p, b1p, w2p, b2p = params
    B = x.shape[0]
    TB, B_pad = _choose_tile(B, block_b)
    x = _prep_x(x)
    if B_pad != B:
        x = jnp.pad(x, ((0, B_pad - B), (0, 0)))

    q_pad = pl.pallas_call(
        dql_forward_kernel,
        out_shape=jax.ShapeDtypeStruct((B_pad, OUT_PAD), jnp.float32),
        grid=(B_pad // TB,),
        in_specs=[pl.BlockSpec((TB, IN_PAD), lambda i: (i, 0))] + _weight_specs(),
        out_specs=pl.BlockSpec((TB, OUT_PAD), lambda i: (i, 0)),
        compiler_params=pltpu.CompilerParams(
            dimension_semantics=("parallel",)),
    )(x, w1p, b1p, w2p, b2p)

    if return_padded:
        return q_pad
    q = q_pad[:B, :OUT_FEATURES]
    act = q_pad[:B, OUT_FEATURES].astype(jnp.int32)
    return q, act


def dql_actions(x, params, *, block_b=1024):
    """Acting path: greedy actions only (no 128-lane q writeback)."""
    w1p, b1p, w2p, b2p = params
    B = x.shape[0]
    TB, B_pad = _choose_tile(B, block_b)
    x = _prep_x(x)
    if B_pad != B:
        x = jnp.pad(x, ((0, B_pad - B), (0, 0)))

    act_pad = pl.pallas_call(
        dql_actions_kernel,
        out_shape=jax.ShapeDtypeStruct((B_pad, ACT_PAD), jnp.int32),
        grid=(B_pad // TB,),
        in_specs=[pl.BlockSpec((TB, IN_PAD), lambda i: (i, 0))] + _weight_specs(),
        out_specs=pl.BlockSpec((TB, ACT_PAD), lambda i: (i, 0)),
        compiler_params=pltpu.CompilerParams(
            dimension_semantics=("parallel",)),
    )(x, w1p, b1p, w2p, b2p)

    return act_pad[:B, 0]


# ---------------------------------------------------------------------------
# Init / reference / test
# ---------------------------------------------------------------------------
def init_params(key):
    """PyTorch nn.Linear-style init: U(-1/sqrt(fan_in), 1/sqrt(fan_in)).

    Weights stored as [in, out] (transposed relative to PyTorch's [out, in]).
    """
    k1, k2, k3, k4 = jax.random.split(key, 4)
    bound1 = 1.0 / (IN_FEATURES ** 0.5)
    bound2 = 1.0 / (HIDDEN ** 0.5)
    w1 = jax.random.uniform(k1, (IN_FEATURES, HIDDEN), jnp.float32, -bound1, bound1)
    b1 = jax.random.uniform(k2, (HIDDEN,), jnp.float32, -bound1, bound1)
    w2 = jax.random.uniform(k3, (HIDDEN, OUT_FEATURES), jnp.float32, -bound2, bound2)
    b2 = jax.random.uniform(k4, (OUT_FEATURES,), jnp.float32, -bound2, bound2)
    return w1, b1, w2, b2


def reference_forward(x, w1, b1, w2, b2):
    h = x @ w1 + b1
    h = jnp.where(h > 0, h, NEG_SLOPE * h)
    return h @ w2 + b2


if __name__ == "__main__":
    key = jax.random.PRNGKey(0)
    k_params, k_x = jax.random.split(key)
    w1, b1, w2, b2 = init_params(k_params)
    params = prepare_params(w1, b1, w2, b2)   # one-time padded/bf16 params

    B = 64  # module's replay batch_size
    x = jax.random.normal(k_x, (B, IN_FEATURES), jnp.float32)

    # Learning path: Q-values + fused greedy actions.
    q, act = dql_forward(x, params)
    q = jax.block_until_ready(q)
    act = jax.block_until_ready(act)

    ref = reference_forward(x, w1, b1, w2, b2)   # f32 reference
    assert q.shape == (B, OUT_FEATURES)
    assert act.shape == (B,)
    # bf16 operands / f32 accumulation: loose tolerance vs the f32 reference.
    assert jnp.allclose(q, ref, atol=5e-2, rtol=5e-2)
    # Fused argmax must agree exactly with argmax over the kernel's own Q.
    assert jnp.array_equal(act, jnp.argmax(q, axis=1).astype(jnp.int32))

    # Acting path: actions-only kernel (e.g. B=1 per env step), must agree.
    act_only = jax.block_until_ready(dql_actions(x, params))
    assert jnp.array_equal(act_only, act)
    act_single = jax.block_until_ready(dql_actions(x[:1], params))
    assert act_single.shape == (1,) and act_single[0] == act[0]

    print("KERNEL_OK")
</pallas_src>

<mosaic_0001>
module attributes {stable_mosaic.version = 11 : i64} {
  func.func @dql_forward_kernel(%arg0: i32, %arg1: memref<64x128xbf16, #tpu.memory_space<vmem>>, %arg2: memref<128x512xbf16, #tpu.memory_space<vmem>>, %arg3: memref<1x512xf32, #tpu.memory_space<vmem>>, %arg4: memref<512x128xbf16, #tpu.memory_space<vmem>>, %arg5: memref<1x128xf32, #tpu.memory_space<vmem>>, %arg6: memref<64x128xf32, #tpu.memory_space<vmem>>) attributes {dimension_semantics = [#tpu.dimension_semantics<parallel>], iteration_bounds = array<i64: 1>, scalar_prefetch = 0 : i64, scratch_operands = 0 : i64, tpu.core_type = #tpu.core_type<tc>, window_params = [{transform_indices = @transform_0, window_bounds = array<i64: 64, 128>}, {pipeline_mode = #tpu.pipeline_mode<synchronous>, transform_indices = @transform_1, window_bounds = array<i64: 128, 512>}, {pipeline_mode = #tpu.pipeline_mode<synchronous>, transform_indices = @transform_2, window_bounds = array<i64: 1, 512>}, {pipeline_mode = #tpu.pipeline_mode<synchronous>, transform_indices = @transform_3, window_bounds = array<i64: 512, 128>}, {pipeline_mode = #tpu.pipeline_mode<synchronous>, transform_indices = @transform_4, window_bounds = array<i64: 1, 128>}, {transform_indices = @transform_5, window_bounds = array<i64: 64, 128>}]} {
    %c0 = arith.constant 0 : index
    %c0_0 = arith.constant 0 : index
    %0 = vector.load %arg1[%c0, %c0_0] : memref<64x128xbf16, #tpu.memory_space<vmem>>, vector<64x128xbf16>
    %c0_1 = arith.constant 0 : index
    %c0_2 = arith.constant 0 : index
    %1 = vector.load %arg2[%c0_1, %c0_2] : memref<128x512xbf16, #tpu.memory_space<vmem>>, vector<128x512xbf16>
    %cst = arith.constant dense<0.000000e+00> : vector<64x512xf32>
    %2 = tpu.matmul %0, %1, %cst {dimension_numbers = #tpu.dot_dimension_numbers<[1], [0], [0], [1], [0, 0, 1, 1], [], []>} : vector<64x128xbf16>, vector<128x512xbf16>, vector<64x512xf32> -> vector<64x512xf32>
    %c0_3 = arith.constant 0 : index
    %c0_4 = arith.constant 0 : index
    %3 = vector.load %arg3[%c0_3, %c0_4] : memref<1x512xf32, #tpu.memory_space<vmem>>, vector<1x512xf32>
    %4 = vector.broadcast %3 : vector<1x512xf32> to vector<64x512xf32>
    %5 = arith.addf %2, %4 : vector<64x512xf32>
    %cst_5 = arith.constant 0.00999999977 : f32
    %6 = vector.broadcast %cst_5 : f32 to vector<64x512xf32>
    %7 = arith.mulf %6, %5 : vector<64x512xf32>
    %8 = arith.maximumf %5, %7 : vector<64x512xf32>
    %9 = arith.truncf %8 : vector<64x512xf32> to vector<64x512xbf16>
    %c0_6 = arith.constant 0 : index
    %c0_7 = arith.constant 0 : index
    %10 = vector.load %arg4[%c0_6, %c0_7] : memref<512x128xbf16, #tpu.memory_space<vmem>>, vector<512x128xbf16>
    %cst_8 = arith.constant dense<0.000000e+00> : vector<64x128xf32>
    %11 = tpu.matmul %9, %10, %cst_8 {dimension_numbers = #tpu.dot_dimension_numbers<[1], [0], [0], [1], [0, 0, 1, 1], [], []>} : vector<64x512xbf16>, vector<512x128xbf16>, vector<64x128xf32> -> vector<64x128xf32>
    %c0_9 = arith.constant 0 : index
    %c0_10 = arith.constant 0 : index
    %12 = vector.load %arg5[%c0_9, %c0_10] : memref<1x128xf32, #tpu.memory_space<vmem>>, vector<1x128xf32>
    %13 = vector.broadcast %12 : vector<1x128xf32> to vector<64x128xf32>
    %14 = arith.addf %11, %13 : vector<64x128xf32>
    %15 = tpu.iota {dimensions = array<i32: 1>} : vector<64x128xi32>
    %c5_i32 = arith.constant 5 : i32
    %16 = vector.broadcast %c5_i32 : i32 to vector<64x128xi32>
    %17 = arith.cmpi slt, %15, %16 : vector<64x128xi32>
    %cst_11 = arith.constant 0xFF800000 : f32
    %18 = vector.broadcast %cst_11 : f32 to vector<64x128xf32>
    %19 = arith.select %17, %14, %18 : vector<64x128xi1>, vector<64x128xf32>
    %cst_12 = arith.constant dense<0xFF800000> : vector<64xf32>
    %20 = vector.multi_reduction <maximumf>, %19, %cst_12 [1] : vector<64x128xf32> to vector<64xf32>
    %21 = vector.shape_cast %20 : vector<64xf32> to vector<64x1xf32>
    %22 = arith.sitofp %15 : vector<64x128xi32> to vector<64x128xf32>
    %23 = vector.broadcast %21 : vector<64x1xf32> to vector<64x128xf32>
    %24 = arith.cmpf oeq, %19, %23 : vector<64x128xf32>
    %cst_13 = arith.constant 1.280000e+02 : f32
    %25 = vector.broadcast %cst_13 : f32 to vector<64x128xf32>
    %26 = arith.select %24, %22, %25 : vector<64x128xi1>, vector<64x128xf32>
    %cst_14 = arith.constant dense<0x7F800000> : vector<64xf32>
    %27 = vector.multi_reduction <minimumf>, %26, %cst_14 [1] : vector<64x128xf32> to vector<64xf32>
    %28 = vector.shape_cast %27 : vector<64xf32> to vector<64x1xf32>
    %29 = tpu.iota {dimensions = array<i32: 1>} : vector<64x128xi32>
    %c5_i32_15 = arith.constant 5 : i32
    %30 = vector.broadcast %c5_i32_15 : i32 to vector<64x128xi32>
    %31 = arith.cmpi eq, %29, %30 : vector<64x128xi32>
    %32 = vector.shape_cast %28 : vector<64x1xf32> to vector<64x1xf32>
    %33 = vector.broadcast %32 : vector<64x1xf32> to vector<64x128xf32>
    %34 = arith.select %31, %33, %14 : vector<64x128xi1>, vector<64x128xf32>
    %c0_16 = arith.constant 0 : index
    %c0_17 = arith.constant 0 : index
    %35 = vector.load %arg6[%c0_16, %c0_17] : memref<64x128xf32, #tpu.memory_space<vmem>>, vector<64x128xf32>
    tpu.vector_store %arg6[%c0_16, %c0_17], %34 {strides = array<i32>} : memref<64x128xf32, #tpu.memory_space<vmem>>, vector<64x128xf32>,
    return
  }
  func.func @transform_0(%arg0: i32) -> (i32, i32) {
    %c0_i32 = arith.constant 0 : i32
    %c0_i32_0 = arith.constant 0 : i32
    return %arg0, %c0_i32 : i32, i32
  }
  func.func @transform_1(%arg0: i32) -> (i32, i32) {
    %c0_i32 = arith.constant 0 : i32
    %c0_i32_0 = arith.constant 0 : i32
    %c0_i32_1 = arith.constant 0 : i32
    return %c0_i32, %c0_i32_0 : i32, i32
  }
  func.func @transform_2(%arg0: i32) -> (i32, i32) {
    %c0_i32 = arith.constant 0 : i32
    %c0_i32_0 = arith.constant 0 : i32
    %c0_i32_1 = arith.constant 0 : i32
    return %c0_i32, %c0_i32_0 : i32, i32
  }
  func.func @transform_3(%arg0: i32) -> (i32, i32) {
    %c0_i32 = arith.constant 0 : i32
    %c0_i32_0 = arith.constant 0 : i32
    %c0_i32_1 = arith.constant 0 : i32
    return %c0_i32, %c0_i32_0 : i32, i32
  }
  func.func @transform_4(%arg0: i32) -> (i32, i32) {
    %c0_i32 = arith.constant 0 : i32
    %c0_i32_0 = arith.constant 0 : i32
    %c0_i32_1 = arith.constant 0 : i32
    return %c0_i32, %c0_i32_0 : i32, i32
  }
  func.func @transform_5(%arg0: i32) -> (i32, i32) {
    %c0_i32 = arith.constant 0 : i32
    %c0_i32_0 = arith.constant 0 : i32
    return %arg0, %c0_i32 : i32, i32
  }
}

</mosaic_0001>

<bundles_post_ra>
// kernel: tpu_custom_call.1
= control target key start
LH: loop header
LB: loop body
LE: loop exit
PB: predicated region body
PF: predicated region fallthrough
CT: control target
= control target key end

     0   :  { %10 = vsyncpa [#allocation3], 0  ;;  %s1585_s0 = inlined_call_operand.hbm [shape: bf16[64,128], index: 0, kind: input, shape index: {}]   ;;  %s1586_s1 = inlined_call_operand.hbm [shape: bf16[128,512], index: 1, kind: input, shape index: {}]   ;;  %s1587_s2 = inlined_call_operand.vmem [shape: f32[1,512], index: 2, kind: input, shape index: {}]   ;;  %s1588_s3 = inlined_call_operand.hbm [shape: bf16[512,128], index: 3, kind: input, shape index: {}]   ;;  %s1589_s4 = inlined_call_operand.vmem [shape: f32[1,128], index: 4, kind: input, shape index: {}]   ;;  %s1590_s5 = inlined_call_operand.hbm [shape: f32[64,128], index: 5, kind: output, shape index: {}]  }
   0x1   :  { %11 = vsyncpa [#allocation6], 0 }
   0x2   :  { %12 = vsyncpa [#allocation4], 0  ;;  %s1361_s18 = smov [#allocation5]   ;;  %s1267_s22 = scalar_lea.hbm %s1586_s1, 4096 }
   0x3   :  { %s30_s19 = sshll.u32 %s1361_s18, 4  ;;  %p1268_p0 = scmp.ne.s32.totalorder %s1586_s1, %s1267_s22  ;;  %s31_s19 = int_to_ptr.vmem [resolvable:$true] %s30_s19 }
   0x4   :  { %p1271_p1 = scmp.lt.u32.totalorder %s1267_s22, %s1586_s1 }
   0x6   :  { %p1273_p2 = pnand %p1271_p1, %p1268_p0 }
   0x8   :  { %1276 = shalt.err (!%p1273_p2)
}
   0x9   :  { %s1277_s27 = scalar_lea.vmem %s31_s19, 4096  ;;  %p1282_p4 = scmp.lt.s32.totalorder %s31_s19, %s31_s19 }
   0xa   :  { %p1278_p3 = scmp.ne.s32.totalorder %s31_s19, %s1277_s27  ;;  %p1283_p5 = scmp.lt.s32.totalorder %s1277_s27, %s1277_s27 }
   0xc   :  { %p1284_p6 = por %p1283_p5, %p1282_p4 }
   0xe   :  { %p1285_p7 = pnand %p1284_p6, %p1278_p3 }
  0x10   :  { %1288 = shalt.err (!%p1285_p7)
}
  0x11   :  { %s1362_s28 = smov 256   ;;  %s1363_s29 = smov 16  }
  0x12   :  { %36 = dma.hbm_to_vmem [thread:$0]  %s1586_s1, 4096, %s31_s19, [#allocation6], %s1362_s28, %s1362_s28, %s1363_s29  }
  0x13   :  { %s1364_s7 = smov [#allocation2]   ;;  %s1289_s11 = scalar_lea.hbm %s1585_s0, 512 }
  0x14   :  { %s18_s8 = sshll.u32 %s1364_s7, 4  ;;  %p1290_p8 = scmp.ne.s32.totalorder %s1585_s0, %s1289_s11  ;;  %s19_s8 = int_to_ptr.vmem [resolvable:$true] %s18_s8 }
  0x15   :  { %p1293_p9 = scmp.lt.u32.totalorder %s1289_s11, %s1585_s0 }
  0x17   :  { %p1295_p10 = pnand %p1293_p9, %p1290_p8 }
  0x19   :  { %1298 = shalt.err (!%p1295_p10)
}
  0x1a   :  { %s1299_s16 = scalar_lea.vmem %s19_s8, 512  ;;  %p1304_p12 = scmp.lt.s32.totalorder %s19_s8, %s19_s8 }
  0x1b   :  { %p1300_p11 = scmp.ne.s32.totalorder %s19_s8, %s1299_s16  ;;  %p1305_p13 = scmp.lt.s32.totalorder %s1299_s16, %s1299_s16 }
  0x1d   :  { %p1306_p0 = por %p1305_p13, %p1304_p12 }
  0x1f   :  { %p1307_p1 = pnand %p1306_p0, %p1300_p11 }
  0x21   :  { %1310 = shalt.err (!%p1307_p1)
}
  0x22   :  { %s1365_s1 = smov 64   ;;  %s1366_s17 = smov 4  }
  0x23   :  { %24 = dma.hbm_to_vmem [thread:$0]  %s1585_s0, 512, %s19_s8, [#allocation3], %s1365_s1, %s1365_s1, %s1366_s17  }
  0x24   :  { %s1367_s20 = smov [#allocation7]   ;;  %s1311_s24 = scalar_lea.hbm %s1588_s3, 4096 }
  0x25   :  { %s44_s21 = sshll.u32 %s1367_s20, 4  ;;  %p1312_p2 = scmp.ne.s32.totalorder %s1588_s3, %s1311_s24  ;;  %s45_s21 = int_to_ptr.vmem [resolvable:$true] %s44_s21 }
  0x26   :  { %p1315_p3 = scmp.lt.u32.totalorder %s1311_s24, %s1588_s3 }
  0x28   :  { %p1317_p4 = pnand %p1315_p3, %p1312_p2 }
  0x2a   :  { %1320 = shalt.err (!%p1317_p4)
}
  0x2b   :  { %s1321_s29 = scalar_lea.vmem %s45_s21, 4096  ;;  %p1326_p6 = scmp.lt.s32.totalorder %s45_s21, %s45_s21 }
  0x2c   :  { %p1322_p5 = scmp.ne.s32.totalorder %s45_s21, %s1321_s29  ;;  %p1327_p7 = scmp.lt.s32.totalorder %s1321_s29, %s1321_s29 }
  0x2e   :  { %p1328_p8 = por %p1327_p7, %p1326_p6 }
  0x30   :  { %p1329_p9 = pnand %p1328_p8, %p1322_p5 }
  0x32   :  { %1332 = shalt.err (!%p1329_p9)
}
  0x33   :  { %50 = dma.hbm_to_vmem [thread:$0]  %s1588_s3, 4096, %s45_s21, [#allocation6], %s1365_s1, %s1365_s1, %s1366_s17  }
  0x34   :  { %1355 = dma.done.wait [#allocation3], 512  }
  0x35   :  { %1356 = vsyncadd [#allocation3], 4294966784 }
  0x36   :  { %1357 = dma.done.wait [#allocation6], 8192  }
  0x37   :  { %1358 = vsyncadd [#allocation6], 4294959104  ;;  %v1368_v0 = vmov 0   ;;  %v1183_v1 = vld [vmem:[#allocation5 + $0x4] ss:$16 sps:$4 sm:$0xff]   ;;  %v1239_v38 = vld [vmem:[#allocation7 + $0x48] sm:$0xff]  }
  0x38   :  { %341 = vmatprep.mubr.bf16.mxu0 %v1368_v0  ;;  %414 = vmatprep.mubr.bf16.mxu1 %v1368_v0  ;;  %v1185_v2 = vld [vmem:[#allocation5 + $0xc] ss:$16 sps:$4 sm:$0xff]   ;;  %v1187_v3 = vld [vmem:[#allocation5] ss:$16 sps:$4 sm:$0xff]   ;;  %v1188_v4 = vld [vmem:[#allocation5 + $0x8] ss:$16 sps:$4 sm:$0xff]  }
  0x39   :  { %309 = vmatprep.subr.bf16.mxu0 %v1183_v1  ;;  %382 = vmatprep.subr.bf16.mxu1 %v1185_v2  ;;  %v1189_v5 = vld [vmem:[#allocation5 + $0x24] ss:$16 sps:$4 sm:$0xff]   ;;  %v1191_v6 = vld [vmem:[#allocation5 + $0x2c] ss:$16 sps:$4 sm:$0xff]   ;;  %v1193_v7 = vld [vmem:[#allocation5 + $0x20] ss:$16 sps:$4 sm:$0xff]  }
  0x3a   :  { %310 = vmatpush1.bf16.msra.mxu0 %v1187_v3  ;;  %383 = vmatpush1.bf16.msra.mxu1 %v1188_v4  ;;  %v1194_v8 = vld [vmem:[#allocation5 + $0x28] ss:$16 sps:$4 sm:$0xff]   ;;  %v1195_v9 = vld [vmem:[#allocation5 + $0x44] ss:$16 sps:$4 sm:$0xff]   ;;  %v1197_v10 = vld [vmem:[#allocation5 + $0x4c] ss:$16 sps:$4 sm:$0xff]  }
  0x3b   :  { %311 = vmatprep.subr.bf16.mxu0 %v1189_v5  ;;  %384 = vmatprep.subr.bf16.mxu1 %v1191_v6  ;;  %v1199_v11 = vld [vmem:[#allocation5 + $0x40] ss:$16 sps:$4 sm:$0xff]   ;;  %v1200_v12 = vld [vmem:[#allocation5 + $0x48] ss:$16 sps:$4 sm:$0xff]   ;;  %v1201_v13 = vld [vmem:[#allocation5 + $0x64] ss:$16 sps:$4 sm:$0xff]   ;;  %v105_v5 = vlaneseq }
  0x3c   :  { %v1203_v14 = vld [vmem:[#allocation5 + $0x6c] ss:$16 sps:$4 sm:$0xff]   ;;  %v1205_v15 = vld [vmem:[#allocation5 + $0x60] ss:$16 sps:$4 sm:$0xff]   ;;  %v1206_v16 = vld [vmem:[#allocation5 + $0x68] ss:$16 sps:$4 sm:$0xff]  }
  0x3d   :  { %v1207_v17 = vld [vmem:[#allocation5 + $0x84] ss:$16 sps:$4 sm:$0xff]   ;;  %v1209_v18 = vld [vmem:[#allocation5 + $0x8c] ss:$16 sps:$4 sm:$0xff]   ;;  %v1211_v19 = vld [vmem:[#allocation5 + $0x80] ss:$16 sps:$4 sm:$0xff]  }
  0x3e   :  { %312 = vmatpush1.bf16.msra.mxu0 %v1193_v7  ;;  %385 = vmatpush1.bf16.msra.mxu1 %v1194_v8  ;;  %v1212_v20 = vld [vmem:[#allocation5 + $0x88] ss:$16 sps:$4 sm:$0xff]   ;;  %v1213_v21 = vld [vmem:[#allocation5 + $0xa4] ss:$16 sps:$4 sm:$0xff]   ;;  %v1215_v22 = vld [vmem:[#allocation5 + $0xac] ss:$16 sps:$4 sm:$0xff]  }
  0x3f   :  { %313 = vmatprep.subr.bf16.mxu0 %v1195_v9  ;;  %386 = vmatprep.subr.bf16.mxu1 %v1197_v10  ;;  %v1217_v23 = vld [vmem:[#allocation5 + $0xa0] ss:$16 sps:$4 sm:$0xff]   ;;  %v1218_v24 = vld [vmem:[#allocation5 + $0xa8] ss:$16 sps:$4 sm:$0xff]   ;;  %v1219_v25 = vld [vmem:[#allocation5 + $0xc4] ss:$16 sps:$4 sm:$0xff]  }
  0x40   :  { %v1221_v26 = vld [vmem:[#allocation5 + $0xcc] ss:$16 sps:$4 sm:$0xff]   ;;  %v1223_v27 = vld [vmem:[#allocation5 + $0xc0] ss:$16 sps:$4 sm:$0xff]   ;;  %v1224_v28 = vld [vmem:[#allocation5 + $0xc8] ss:$16 sps:$4 sm:$0xff]  }
  0x41   :  { %v1225_v29 = vld [vmem:[#allocation5 + $0xe4] ss:$16 sps:$4 sm:$0xff]   ;;  %v1227_v30 = vld [vmem:[#allocation5 + $0xec] ss:$16 sps:$4 sm:$0xff]   ;;  %v1229_v31 = vld [vmem:[#allocation5 + $0xe0] ss:$16 sps:$4 sm:$0xff]  }
  0x42   :  { %314 = vmatpush1.bf16.msra.mxu0 %v1199_v11  ;;  %387 = vmatpush1.bf16.msra.mxu1 %v1200_v12  ;;  %v1230_v32 = vld [vmem:[#allocation5 + $0xe8] ss:$16 sps:$4 sm:$0xff]   ;;  %v1235_v33 = vld [vmem:[#allocation7 + $0x40] sm:$0xff]   ;;  %v1243_v43 = vld [vmem:[#allocation7 + $0x50] sm:$0xff]   ;;  %v106_v6 = vshrl.u32 %v105_v5, 7 }
  0x43   :  { %315 = vmatprep.subr.bf16.mxu0 %v1201_v13  ;;  %388 = vmatprep.subr.bf16.mxu1 %v1203_v14  ;;  %v1237_v34 = vld [vmem:[#allocation7 + $0xc0] sm:$0xff]   ;;  %v1241_v39 = vld [vmem:[#allocation7 + $0xc8] sm:$0xff]   ;;  %v1245_v44 = vld [vmem:[#allocation7 + $0xd0] sm:$0xff]  }
  0x44   :  { %v1231_v35 = vld [vmem:[#allocation2] sm:$0xff]   ;;  %v1240_v40 = vld [vmem:[#allocation7 + $0x8] sm:$0xff]   ;;  %v1244_v45 = vld [vmem:[#allocation7 + $0x10] sm:$0xff]   ;;  %v107_v7 = vsub.s32 0, %v106_v6  ;;  %v115_v8 = vsub.s32 2, %v106_v6  ;;  %v111_v10 = vsub.s32 1, %v106_v6 }
  0x45   :  { %v1236_v36 = vld [vmem:[#allocation7] sm:$0xff]   ;;  %v1242_v41 = vld [vmem:[#allocation7 + $0x88] sm:$0xff]   ;;  %v1246_v46 = vld [vmem:[#allocation7 + $0x90] sm:$0xff]   ;;  %v119_v11 = vsub.s32 3, %v106_v6 }
  0x46   :  { %316 = vmatpush1.bf16.msra.mxu0 %v1205_v15  ;;  %389 = vmatpush1.bf16.msra.mxu1 %v1206_v16  ;;  %v1238_v37 = vld [vmem:[#allocation7 + $0x80] sm:$0xff]   ;;  %v1232_v42 = vld [vmem:[#allocation2 + $0x8] sm:$0xff]   ;;  %v1247_v47 = vld [vmem:[#allocation7 + $0x58] sm:$0xff]  }
  0x47   :  { %317 = vmatprep.subr.bf16.mxu0 %v1207_v17  ;;  %390 = vmatprep.subr.bf16.mxu1 %v1209_v18  ;;  %v1249_v48 = vld [vmem:[#allocation7 + $0xd8] sm:$0xff]   ;;  %v1233_v51 = vld [vmem:[#allocation2 + $0x10] sm:$0xff]   ;;  %v1251_v52 = vld [vmem:[#allocation7 + $0x60] sm:$0xff]  }
  0x48   :  { %v1248_v49 = vld [vmem:[#allocation7 + $0x18] sm:$0xff]   ;;  %v1253_v53 = vld [vmem:[#allocation7 + $0xe0] sm:$0xff]   ;;  %v1255_v57 = vld [vmem:[#allocation7 + $0x68] sm:$0xff]  }
  0x49   :  { %v1250_v50 = vld [vmem:[#allocation7 + $0x98] sm:$0xff]   ;;  %v1252_v54 = vld [vmem:[#allocation7 + $0x20] sm:$0xff]   ;;  %v1257_v58 = vld [vmem:[#allocation7 + $0xe8] sm:$0xff]  }
  0x4a   :  { %318 = vmatpush1.bf16.msra.mxu0 %v1211_v19  ;;  %391 = vmatpush1.bf16.msra.mxu1 %v1212_v20  ;;  %v1254_v55 = vld [vmem:[#allocation7 + $0xa0] sm:$0xff]   ;;  %v1234_v56 = vld [vmem:[#allocation2 + $0x18] sm:$0xff]   ;;  %v1256_v59 = vld [vmem:[#allocation7 + $0x28] sm:$0xff]  }
  0x4b   :  { %319 = vmatprep.subr.bf16.mxu0 %v1213_v21  ;;  %392 = vmatprep.subr.bf16.mxu1 %v1215_v22  ;;  %v1258_v60 = vld [vmem:[#allocation7 + $0xa8] sm:$0xff]   ;;  %v1259_v61 = vld [vmem:[#allocation7 + $0x70] sm:$0xff]   ;;  %v1265_v2 = vld [vmem:[#allocation7 + $0xf8] sm:$0xff]  }
  0x4c   :  { %v1261_v62 = vld [vmem:[#allocation7 + $0xf0] sm:$0xff]   ;;  %v1264_v3 = vld [vmem:[#allocation7 + $0x38] sm:$0xff]   ;;  %v103_v9 = vld [vmem:[%s1587_s2] sm:$0xf] }
  0x4d   :  { %v1260_v63 = vld [vmem:[#allocation7 + $0x30] sm:$0xff]   ;;  %v1266_v4 = vld [vmem:[#allocation7 + $0xb8] sm:$0xff]   ;;  %v1450_v12 = vrot.slane %v103_v9, %v107_v7  ;;  %v1452_v13 = vrot.slane %v103_v9, %v115_v8  ;;  %v1454_v14 = vrot.slane %v103_v9, %v111_v10  ;;  %v1456_v15 = vrot.slane %v103_v9, %v119_v11 }
  0x4e   :  { %320 = vmatpush1.bf16.msra.mxu0 %v1217_v23  ;;  %393 = vmatpush1.bf16.msra.mxu1 %v1218_v24  ;;  %v1262_v1 = vld [vmem:[#allocation7 + $0xb0] sm:$0xff]  }
  0x4f   :  { %321 = vmatprep.subr.bf16.mxu0 %v1219_v25  ;;  %394 = vmatprep.subr.bf16.mxu1 %v1221_v26 }
  0x52   :  { %322 = vmatpush1.bf16.msra.mxu0 %v1223_v27  ;;  %395 = vmatpush1.bf16.msra.mxu1 %v1224_v28 }
  0x53   :  { %323 = vmatprep.subr.bf16.mxu0 %v1225_v29  ;;  %396 = vmatprep.subr.bf16.mxu1 %v1227_v30 }
  0x56   :  { %324 = vmatpush1.bf16.msra.mxu0 %v1229_v31  ;;  %397 = vmatpush1.bf16.msra.mxu1 %v1230_v32 }
  0x57   :  { %1092 = vmatprep.subr.bf16.mxu0 %v1235_v33  ;;  %1132 = vmatprep.subr.bf16.mxu1 %v1237_v34 }
  0x59   :  { %342 = vmatmul.mubr.bf16.vlgmr.msra.gmra.mrb[0].mxu0 %v1231_v35  ;;  %415 = vmatmul.mubr.bf16.vlgmr.msra.gmra.mrb[0].mxu1 %v1231_v35 }
  0x5a   :  { %351 = vmatprep.mubr.bf16.mxu0 %v1368_v0  ;;  %424 = vmatprep.mubr.bf16.mxu1 %v1368_v0 }
  0x5b   :  { %1093 = vmatpush3.bf16.msra.mxu0 %v1236_v36  ;;  %1133 = vmatpush3.bf16.msra.mxu1 %v1238_v37 }
  0x5c   :  { %1094 = vmatprep.subr.bf16.mxu0 %v1239_v38  ;;  %1134 = vmatprep.subr.bf16.mxu1 %v1241_v39 }
  0x5f   :  { %1095 = vmatpush3.bf16.msra.mxu0 %v1240_v40  ;;  %1135 = vmatpush3.bf16.msra.mxu1 %v1242_v41 }
  0x60   :  { %1096 = vmatprep.subr.bf16.mxu0 %v1243_v43  ;;  %1136 = vmatprep.subr.bf16.mxu1 %v1245_v44 }
  0x61   :  { %352 = vmatmul.mubr.bf16.gmra.mrb[4].mxu0 %v1232_v42  ;;  %425 = vmatmul.mubr.bf16.gmra.mrb[4].mxu1 %v1232_v42 }
  0x62   :  { %361 = vmatprep.mubr.bf16.mxu0 %v1368_v0  ;;  %434 = vmatprep.mubr.bf16.mxu1 %v1368_v0 }
  0x63   :  { %1097 = vmatpush3.bf16.msra.mxu0 %v1244_v45  ;;  %1137 = vmatpush3.bf16.msra.mxu1 %v1246_v46 }
  0x64   :  { %1098 = vmatprep.subr.bf16.mxu0 %v1247_v47  ;;  %1138 = vmatprep.subr.bf16.mxu1 %v1249_v48 }
  0x67   :  { %1099 = vmatpush3.bf16.msra.mxu0 %v1248_v49  ;;  %1139 = vmatpush3.bf16.msra.mxu1 %v1250_v50 }
  0x68   :  { %1100 = vmatprep.subr.bf16.mxu0 %v1251_v52  ;;  %1140 = vmatprep.subr.bf16.mxu1 %v1253_v53 }
  0x69   :  { %362 = vmatmul.mubr.bf16.gmra.mrb[8].mxu0 %v1233_v51  ;;  %435 = vmatmul.mubr.bf16.gmra.mrb[8].mxu1 %v1233_v51 }
  0x6a   :  { %371 = vmatprep.mubr.bf16.mxu0 %v1368_v0  ;;  %444 = vmatprep.mubr.bf16.mxu1 %v1368_v0  ;;  %v1263_v0 = vld [vmem:[#allocation7 + $0x78] sm:$0xff]  }
  0x6b   :  { %1101 = vmatpush3.bf16.msra.mxu0 %v1252_v54  ;;  %1141 = vmatpush3.bf16.msra.mxu1 %v1254_v55 }
  0x6c   :  { %1102 = vmatprep.subr.bf16.mxu0 %v1255_v57  ;;  %1142 = vmatprep.subr.bf16.mxu1 %v1257_v58 }
  0x6f   :  { %1103 = vmatpush3.bf16.msra.mxu0 %v1256_v59  ;;  %1143 = vmatpush3.bf16.msra.mxu1 %v1258_v60 }
  0x70   :  { %1104 = vmatprep.subr.bf16.mxu0 %v1259_v61  ;;  %1144 = vmatprep.subr.bf16.mxu1 %v1261_v62 }
  0x71   :  { %372 = vmatmul.mubr.bf16.gmra.mrb[12].mxu0 %v1234_v56  ;;  %445 = vmatmul.mubr.bf16.gmra.mrb[12].mxu1 %v1234_v56 }
  0x73   :  { %1105 = vmatpush3.bf16.msra.mxu0 %v1260_v63  ;;  %1145 = vmatpush3.bf16.msra.mxu1 %v1262_v1 }
  0x74   :  { %1106 = vmatprep.subr.bf16.mxu0 %v1263_v0  ;;  %1146 = vmatprep.subr.bf16.mxu1 %v1265_v2 }
  0x77   :  { %1107 = vmatpush3.bf16.msra.mxu0 %v1264_v3  ;;  %1147 = vmatpush3.bf16.msra.mxu1 %v1266_v4 }
 0x12c   :  { %v343_v16 = vpop.f32.mrb[0].mxu0  ;;  %v416_v17 = vpop.f32.mrb[0].mxu1 }
 0x12d   :  { %v344_v18 = vadd.f32 %v343_v16, %v1450_v12  ;;  %v417_v19 = vadd.f32 %v416_v17, %v1452_v13  ;;  %v345_v20 = vpop.f32.mrb[1].mxu0  ;;  %v418_v21 = vpop.f32.mrb[1].mxu1 }
 0x12e   :  { %v346_v22 = vadd.f32 %v345_v20, %v1454_v14  ;;  %v419_v23 = vadd.f32 %v418_v21, %v1456_v15  ;;  %v347_v24 = vpop.f32.mrb[2].mxu0  ;;  %v420_v25 = vpop.f32.mrb[2].mxu1 }
 0x12f   :  { %v455_v26 = vmul.f32 0.01, %v344_v18  ;;  %v457_v27 = vmul.f32 0.01, %v417_v19  ;;  %v348_v28 = vadd.f32 %v347_v24, %v1450_v12  ;;  %v421_v29 = vadd.f32 %v420_v25, %v1452_v13  ;;  %v349_v30 = vpop.f32.mrb[3].mxu0  ;;  %v422_v31 = vpop.f32.mrb[3].mxu1 }
 0x130   :  { %v456_v32 = vmul.f32 0.01, %v346_v22  ;;  %v458_v33 = vmul.f32 0.01, %v419_v23  ;;  %v350_v34 = vadd.f32 %v349_v30, %v1454_v14  ;;  %v423_v35 = vadd.f32 %v422_v31, %v1456_v15 }
 0x131   :  { %v459_v36 = vmul.f32 0.01, %v348_v28  ;;  %v461_v37 = vmul.f32 0.01, %v421_v29  ;;  %v487_v40 = vmax.f32 %v344_v18, %v455_v26  ;;  %v489_v41 = vmax.f32 %v417_v19, %v457_v27 }
 0x132   :  { %v460_v38 = vmul.f32 0.01, %v350_v34  ;;  %v462_v39 = vmul.f32 0.01, %v423_v35  ;;  %v488_v44 = vmax.f32 %v346_v22, %v456_v32  ;;  %v490_v45 = vmax.f32 %v419_v23, %v458_v33 }
 0x133   :  { %v491_v42 = vmax.f32 %v348_v28, %v459_v36  ;;  %v493_v43 = vmax.f32 %v421_v29, %v461_v37 }
 0x134   :  { %v492_v46 = vmax.f32 %v350_v34, %v460_v38  ;;  %v494_v47 = vmax.f32 %v423_v35, %v462_v39  ;;  %v353_v48 = vpop.f32.mrb[4].mxu0  ;;  %v426_v49 = vpop.f32.mrb[4].mxu1 }
 0x135   :  { %v519_v50 = vpack.c.bf16 %v491_v42, %v487_v40  ;;  %v521_v51 = vpack.c.bf16 %v493_v43, %v489_v41  ;;  %v354_v52 = vadd.f32 %v353_v48, %v1450_v12  ;;  %v427_v53 = vadd.f32 %v426_v49, %v1452_v13  ;;  %v355_v54 = vpop.f32.mrb[5].mxu0  ;;  %v428_v55 = vpop.f32.mrb[5].mxu1 }
 0x136   :  { %v356_v56 = vadd.f32 %v355_v54, %v1454_v14  ;;  %v429_v57 = vadd.f32 %v428_v55, %v1456_v15  ;;  %v357_v58 = vpop.f32.mrb[6].mxu0  ;;  %v430_v59 = vpop.f32.mrb[6].mxu1  ;;  %v520_v60 = vpack.c.bf16 %v492_v46, %v488_v44  ;;  %v522_v61 = vpack.c.bf16 %v494_v47, %v490_v45 }
 0x137   :  { %v463_v62 = vmul.f32 0.01, %v354_v52  ;;  %v465_v63 = vmul.f32 0.01, %v427_v53  ;;  %v358_v1 = vadd.f32 %v357_v58, %v1450_v12  ;;  %v431_v0 = vadd.f32 %v430_v59, %v1452_v13  ;;  %v359_v2 = vpop.f32.mrb[7].mxu0  ;;  %v432_v3 = vpop.f32.mrb[7].mxu1 }
 0x138   :  { %v464_v4 = vmul.f32 0.01, %v356_v56  ;;  %v466_v6 = vmul.f32 0.01, %v429_v57  ;;  %v360_v7 = vadd.f32 %v359_v2, %v1454_v14  ;;  %v433_v8 = vadd.f32 %v432_v3, %v1456_v15  ;;  %830 = vmatprep.mubr.bf16.mxu0 %v520_v60  ;;  %895 = vmatprep.mubr.bf16.mxu1 %v522_v61 }
 0x139   :  { %v467_v9 = vmul.f32 0.01, %v358_v1  ;;  %v469_v10 = vmul.f32 0.01, %v431_v0  ;;  %831 = vmatmul.mubr.bf16.vlgmr.msra.gmra.mrb[16].mxu0 %v519_v50  ;;  %896 = vmatmul.mubr.bf16.vlgmr.msra.gmra.mrb[16].mxu1 %v521_v51  ;;  %v495_v17 = vmax.f32 %v354_v52, %v463_v62  ;;  %v497_v18 = vmax.f32 %v427_v53, %v465_v63 }
 0x13a   :  { %v468_v11 = vmul.f32 0.01, %v360_v7  ;;  %v470_v16 = vmul.f32 0.01, %v433_v8  ;;  %v496_v21 = vmax.f32 %v356_v56, %v464_v4  ;;  %v498_v22 = vmax.f32 %v429_v57, %v466_v6 }
 0x13b   :  { %v499_v19 = vmax.f32 %v358_v1, %v467_v9  ;;  %v501_v20 = vmax.f32 %v431_v0, %v469_v10 }
 0x13c   :  { %v500_v23 = vmax.f32 %v360_v7, %v468_v11  ;;  %v502_v24 = vmax.f32 %v433_v8, %v470_v16  ;;  %v363_v25 = vpop.f32.mrb[8].mxu0  ;;  %v436_v26 = vpop.f32.mrb[8].mxu1 }
 0x13d   :  { %v364_v27 = vadd.f32 %v363_v25, %v1450_v12  ;;  %v437_v28 = vadd.f32 %v436_v26, %v1452_v13  ;;  %v365_v29 = vpop.f32.mrb[9].mxu0  ;;  %v438_v30 = vpop.f32.mrb[9].mxu1  ;;  %v523_v31 = vpack.c.bf16 %v499_v19, %v495_v17  ;;  %v525_v32 = vpack.c.bf16 %v501_v20, %v497_v18 }
 0x13e   :  { %v366_v33 = vadd.f32 %v365_v29, %v1454_v14  ;;  %v439_v34 = vadd.f32 %v438_v30, %v1456_v15  ;;  %v367_v35 = vpop.f32.mrb[10].mxu0  ;;  %v440_v36 = vpop.f32.mrb[10].mxu1  ;;  %v524_v37 = vpack.c.bf16 %v500_v23, %v496_v21  ;;  %v526_v38 = vpack.c.bf16 %v502_v24, %v498_v22 }
 0x13f   :  { %v471_v39 = vmul.f32 0.01, %v364_v27  ;;  %v473_v40 = vmul.f32 0.01, %v437_v28  ;;  %v368_v41 = vadd.f32 %v367_v35, %v1450_v12  ;;  %v441_v42 = vadd.f32 %v440_v36, %v1452_v13  ;;  %v369_v43 = vpop.f32.mrb[11].mxu0  ;;  %v442_v44 = vpop.f32.mrb[11].mxu1 }
 0x140   :  { %v472_v45 = vmul.f32 0.01, %v366_v33  ;;  %v474_v46 = vmul.f32 0.01, %v439_v34  ;;  %v370_v47 = vadd.f32 %v369_v43, %v1454_v14  ;;  %v443_v48 = vadd.f32 %v442_v44, %v1456_v15  ;;  %838 = vmatprep.mubr.bf16.mxu0 %v524_v37  ;;  %903 = vmatprep.mubr.bf16.mxu1 %v526_v38 }
 0x141   :  { %v475_v49 = vmul.f32 0.01, %v368_v41  ;;  %v477_v50 = vmul.f32 0.01, %v441_v42  ;;  %839 = vmatmul.mubr.bf16.gmra.mrb[20].mxu0 %v523_v31  ;;  %904 = vmatmul.mubr.bf16.gmra.mrb[20].mxu1 %v525_v32  ;;  %v503_v53 = vmax.f32 %v364_v27, %v471_v39  ;;  %v505_v54 = vmax.f32 %v437_v28, %v473_v40  ;;  %v1493_v40 = vld [vmem:[%s1589_s4] ss:$0 sm:$0xff] }
 0x142   :  { %v476_v51 = vmul.f32 0.01, %v370_v47  ;;  %v478_v52 = vmul.f32 0.01, %v443_v48  ;;  %v504_v57 = vmax.f32 %v366_v33, %v472_v45  ;;  %v506_v58 = vmax.f32 %v439_v34, %v474_v46  ;;  %s1369_s4 = smov [#allocation8]  }
 0x143   :  { %v507_v55 = vmax.f32 %v368_v41, %v475_v49  ;;  %v509_v56 = vmax.f32 %v441_v42, %v477_v50  ;;  %v1496_v43 = vand.u32 127, %v105_v5  ;;  %s1010_s8 = sshll.u32 %s1369_s4, 4  ;;  %s1011_s8 = int_to_ptr.vmem [resolvable:$true] %s1010_s8 }
 0x144   :  { %v508_v59 = vmax.f32 %v370_v47, %v476_v51  ;;  %v510_v60 = vmax.f32 %v443_v48, %v478_v52  ;;  %v373_v61 = vpop.f32.mrb[12].mxu0  ;;  %v446_v62 = vpop.f32.mrb[12].mxu1  ;;  %s1333_s9 = scalar_lea.vmem %s1011_s8, 1024  ;;  %p1338_p11 = scmp.lt.s32.totalorder %s1011_s8, %s1011_s8 }
 0x145   :  { %v374_v63 = vadd.f32 %v373_v61, %v1450_v12  ;;  %v447_v1 = vadd.f32 %v446_v62, %v1452_v13  ;;  %v375_v0 = vpop.f32.mrb[13].mxu0  ;;  %v448_v2 = vpop.f32.mrb[13].mxu1  ;;  %v527_v3 = vpack.c.bf16 %v507_v55, %v503_v53  ;;  %v529_v4 = vpack.c.bf16 %v509_v56, %v505_v54  ;;  %p1334_p10 = scmp.ne.s32.totalorder %s1011_s8, %s1333_s9  ;;  %p1339_p12 = scmp.lt.s32.totalorder %s1333_s9, %s1333_s9 }
 0x146   :  { %v376_v6 = vadd.f32 %v375_v0, %v1454_v14  ;;  %v449_v7 = vadd.f32 %v448_v2, %v1456_v15  ;;  %v377_v8 = vpop.f32.mrb[14].mxu0  ;;  %v450_v9 = vpop.f32.mrb[14].mxu1  ;;  %v528_v10 = vpack.c.bf16 %v508_v59, %v504_v57  ;;  %v530_v11 = vpack.c.bf16 %v510_v60, %v506_v58 }
 0x147   :  { %v479_v16 = vmul.f32 0.01, %v374_v63  ;;  %v481_v17 = vmul.f32 0.01, %v447_v1  ;;  %v378_v18 = vadd.f32 %v377_v8, %v1450_v12  ;;  %v451_v19 = vadd.f32 %v450_v9, %v1452_v13  ;;  %v379_v20 = vpop.f32.mrb[15].mxu0  ;;  %v452_v21 = vpop.f32.mrb[15].mxu1  ;;  %p1340_p13 = por %p1339_p12, %p1338_p11 }
 0x148   :  { %v480_v22 = vmul.f32 0.01, %v376_v6  ;;  %v482_v23 = vmul.f32 0.01, %v449_v7  ;;  %v380_v24 = vadd.f32 %v379_v20, %v1454_v14  ;;  %v453_v25 = vadd.f32 %v452_v21, %v1456_v15  ;;  %846 = vmatprep.mubr.bf16.mxu0 %v528_v10  ;;  %911 = vmatprep.mubr.bf16.mxu1 %v530_v11 }
 0x149   :  { %v483_v26 = vmul.f32 0.01, %v378_v18  ;;  %v485_v27 = vmul.f32 0.01, %v451_v19  ;;  %847 = vmatmul.mubr.bf16.gmra.mrb[24].mxu0 %v527_v3  ;;  %912 = vmatmul.mubr.bf16.gmra.mrb[24].mxu1 %v529_v4  ;;  %v511_v30 = vmax.f32 %v374_v63, %v479_v16  ;;  %v513_v12 = vmax.f32 %v447_v1, %v481_v17  ;;  %p1341_p0 = pnand %p1340_p13, %p1334_p10 }
 0x14a   :  { %v484_v28 = vmul.f32 0.01, %v380_v24  ;;  %v486_v29 = vmul.f32 0.01, %v453_v25  ;;  %v512_v32 = vmax.f32 %v376_v6, %v480_v22  ;;  %v514_v33 = vmax.f32 %v449_v7, %v482_v23 }
 0x14b   :  { %v515_v31 = vmax.f32 %v378_v18, %v483_v26  ;;  %v517_v13 = vmax.f32 %v451_v19, %v485_v27  ;;  %vm930_vm0 = vcmp.lt.s32.totalorder %v1496_v43, 5  ;;  %vm988_vm9 = vcmp.eq.s32.totalorder %v1496_v43, 5 }
 0x14c   :  { %v516_v34 = vmax.f32 %v380_v24, %v484_v28  ;;  %v518_v35 = vmax.f32 %v453_v25, %v486_v29 }
 0x14d   :  { %v531_v36 = vpack.c.bf16 %v515_v31, %v511_v30  ;;  %v533_v14 = vpack.c.bf16 %v517_v13, %v513_v12 }
 0x14e   :  { %v532_v37 = vpack.c.bf16 %v516_v34, %v512_v32  ;;  %v534_v15 = vpack.c.bf16 %v518_v35, %v514_v33 }
 0x150   :  { %854 = vmatprep.mubr.bf16.mxu0 %v532_v37  ;;  %919 = vmatprep.mubr.bf16.mxu1 %v534_v15 }
 0x151   :  { %855 = vmatmul.mubr.bf16.gmra.mrb[28].mxu0 %v531_v36  ;;  %920 = vmatmul.mubr.bf16.gmra.mrb[28].mxu1 %v533_v14 }
 0x20c   :  { %v1108_v38 = vpop.f32.mrb[16].mxu0  ;;  %v1148_v39 = vpop.f32.mrb[16].mxu1 }
 0x20d   :  { %v1109_v41 = vpop.f32.mrb[17].mxu0  ;;  %v1149_v42 = vpop.f32.mrb[17].mxu1 }
 0x20e   :  { %v1110_v44 = vadd.f32 %v1109_v41, %v1108_v38  ;;  %v1150_v45 = vadd.f32 %v1149_v42, %v1148_v39  ;;  %v1111_v46 = vpop.f32.mrb[18].mxu0  ;;  %v1151_v47 = vpop.f32.mrb[18].mxu1 }
 0x20f   :  { %v1112_v48 = vpop.f32.mrb[19].mxu0  ;;  %v1152_v49 = vpop.f32.mrb[19].mxu1 }
 0x210   :  { %v833_v50 = vadd.f32 %v1110_v44, %v1493_v40  ;;  %v1113_v51 = vadd.f32 %v1112_v48, %v1111_v46  ;;  %v1153_v52 = vadd.f32 %v1152_v49, %v1151_v47 }
 0x212   :  { %v836_v53 = vadd.f32 %v1113_v51, %v1493_v40  ;;  %v1501_v54 = vadd.f32 %v1150_v45, %v833_v50  ;;  %v955_v50 = vcvt.s32.f32 %v1496_v43 }
 0x214   :  { %v1114_v55 = vpop.f32.mrb[20].mxu0  ;;  %v1154_v56 = vpop.f32.mrb[20].mxu1  ;;  %v1506_v5 = vsel %vm930_vm0, %v1501_v54, -inf  ;;  %v1508_v57 = vadd.f32 %v1153_v52, %v836_v53 }
 0x215   :  { %v1115_v58 = vpop.f32.mrb[21].mxu0  ;;  %v1155_v59 = vpop.f32.mrb[21].mxu1  ;;  %939 = vmax.xlane.f32.xlu0 %v1506_v5 }
 0x216   :  { %v1116_v60 = vadd.f32 %v1115_v58, %v1114_v55  ;;  %v1156_v61 = vadd.f32 %v1155_v59, %v1154_v56  ;;  %v1117_v62 = vpop.f32.mrb[22].mxu0  ;;  %v1157_v63 = vpop.f32.mrb[22].mxu1  ;;  %v932_v6 = vsel %vm930_vm0, %v1508_v57, -inf }
 0x217   :  { %v1118_v1 = vpop.f32.mrb[23].mxu0  ;;  %v1158_v0 = vpop.f32.mrb[23].mxu1 }
 0x218   :  { %v841_v2 = vadd.f32 %v1116_v60, %v1493_v40  ;;  %v1119_v3 = vadd.f32 %v1118_v1, %v1117_v62  ;;  %v1159_v4 = vadd.f32 %v1158_v0, %v1157_v63 }
 0x219   :  { %941 = vmax.xlane.f32.xlu0 %v932_v6 }
 0x21a   :  { %v844_v7 = vadd.f32 %v1119_v3, %v1493_v40  ;;  %v1516_v8 = vadd.f32 %v1156_v61, %v841_v2 }
 0x21c   :  { %v1120_v9 = vpop.f32.mrb[24].mxu0  ;;  %v1160_v10 = vpop.f32.mrb[24].mxu1  ;;  %v933_v11 = vsel %vm930_vm0, %v1516_v8, -inf  ;;  %v1521_v16 = vadd.f32 %v1159_v4, %v844_v7 }
 0x21d   :  { %v1121_v17 = vpop.f32.mrb[25].mxu0  ;;  %v1161_v18 = vpop.f32.mrb[25].mxu1  ;;  %943 = vmax.xlane.f32.xlu1 %v933_v11 }
 0x21e   :  { %v1122_v19 = vadd.f32 %v1121_v17, %v1120_v9  ;;  %v1162_v20 = vadd.f32 %v1161_v18, %v1160_v10  ;;  %v1123_v21 = vpop.f32.mrb[26].mxu0  ;;  %v1163_v22 = vpop.f32.mrb[26].mxu1  ;;  %v934_v28 = vsel %vm930_vm0, %v1521_v16, -inf }
 0x21f   :  { %v1124_v23 = vpop.f32.mrb[27].mxu0  ;;  %v1164_v24 = vpop.f32.mrb[27].mxu1 }
 0x220   :  { %v849_v25 = vadd.f32 %v1122_v19, %v1493_v40  ;;  %v1125_v26 = vadd.f32 %v1124_v23, %v1123_v21  ;;  %v1165_v27 = vadd.f32 %v1164_v24, %v1163_v22 }
 0x221   :  { %945 = vmax.xlane.f32.xlu1 %v934_v28 }
 0x222   :  { %v852_v29 = vadd.f32 %v1125_v26, %v1493_v40  ;;  %v1528_v30 = vadd.f32 %v1162_v20, %v849_v25 }
 0x224   :  { %v1126_v12 = vpop.f32.mrb[28].mxu0  ;;  %v1166_v31 = vpop.f32.mrb[28].mxu1  ;;  %v935_v13 = vsel %vm930_vm0, %v1528_v30, -inf  ;;  %v1533_v32 = vadd.f32 %v1165_v27, %v852_v29 }
 0x225   :  { %v1127_v33 = vpop.f32.mrb[29].mxu0  ;;  %v1167_v34 = vpop.f32.mrb[29].mxu1  ;;  %947 = vmax.xlane.f32.xlu0 %v935_v13 }
 0x226   :  { %v1128_v35 = vadd.f32 %v1127_v33, %v1126_v12  ;;  %v1168_v36 = vadd.f32 %v1167_v34, %v1166_v31  ;;  %v1129_v14 = vpop.f32.mrb[30].mxu0  ;;  %v1169_v37 = vpop.f32.mrb[30].mxu1  ;;  %v936_v15 = vsel %vm930_vm0, %v1533_v32, -inf }
 0x227   :  { %v1130_v38 = vpop.f32.mrb[31].mxu0  ;;  %v1170_v39 = vpop.f32.mrb[31].mxu1  ;;  %949 = vmax.xlane.f32.xlu1 %v936_v15 }
 0x228   :  { %v857_v41 = vadd.f32 %v1128_v35, %v1493_v40  ;;  %v1131_v42 = vadd.f32 %v1130_v38, %v1129_v14  ;;  %v1171_v44 = vadd.f32 %v1170_v39, %v1169_v37 }
 0x22a   :  { %v860_v45 = vadd.f32 %v1131_v42, %v1493_v40  ;;  %v922_v46 = vadd.f32 %v1168_v36, %v857_v41 }
 0x22c   :  { %v937_v47 = vsel %vm930_vm0, %v922_v46, -inf  ;;  %v1542_v48 = vadd.f32 %v1171_v44, %v860_v45 }
 0x22d   :  { %951 = vmax.xlane.f32.xlu0 %v937_v47 }
 0x22e   :  { %v938_v49 = vsel %vm930_vm0, %v1542_v48, -inf }
 0x22f   :  { %953 = vmax.xlane.f32.xlu1 %v938_v49 }
 0x2a2   :  { %v940_v51 = vpop.xlane.xlu0 %939 }
 0x2a3   :  { %vm956_vm1 = vcmp.eq.f32.partialorder %v1506_v5, %v940_v51 }
 0x2a4   :  { %v964_v52 = vsel %vm956_vm1, %v955_v50, 128.0 }
 0x2a5   :  { %972 = vmin.xlane.f32.xlu0 %v964_v52 }
 0x2a6   :  { %v942_v40 = vpop.xlane.xlu0 %941 }
 0x2a7   :  { %vm957_vm2 = vcmp.eq.f32.partialorder %v932_v6, %v942_v40 }
 0x2a8   :  { %v965_v53 = vsel %vm957_vm2, %v955_v50, 128.0 }
 0x2a9   :  { %974 = vmin.xlane.f32.xlu1 %v965_v53 }
 0x2aa   :  { %v944_v55 = vpop.xlane.xlu1 %943 }
 0x2ab   :  { %vm958_vm3 = vcmp.eq.f32.partialorder %v933_v11, %v944_v55 }
 0x2ac   :  { %v966_v56 = vsel %vm958_vm3, %v955_v50, 128.0 }
 0x2ad   :  { %976 = vmin.xlane.f32.xlu0 %v966_v56 }
 0x2ae   :  { %v946_v58 = vpop.xlane.xlu1 %945 }
 0x2af   :  { %vm959_vm4 = vcmp.eq.f32.partialorder %v934_v28, %v946_v58 }
 0x2b0   :  { %v967_v59 = vsel %vm959_vm4, %v955_v50, 128.0 }
 0x2b1   :  { %978 = vmin.xlane.f32.xlu1 %v967_v59 }
 0x2b2   :  { %v948_v60 = vpop.xlane.xlu0 %947 }
 0x2b3   :  { %vm960_vm5 = vcmp.eq.f32.partialorder %v935_v13, %v948_v60 }
 0x2b4   :  { %v950_v61 = vpop.xlane.xlu1 %949  ;;  %v968_v62 = vsel %vm960_vm5, %v955_v50, 128.0 }
 0x2b5   :  { %vm961_vm6 = vcmp.eq.f32.partialorder %v936_v15, %v950_v61  ;;  %980 = vmin.xlane.f32.xlu0 %v968_v62 }
 0x2b6   :  { %v969_v5 = vsel %vm961_vm6, %v955_v50, 128.0 }
 0x2b7   :  { %982 = vmin.xlane.f32.xlu1 %v969_v5 }
 0x2ba   :  { %v952_v63 = vpop.xlane.xlu0 %951 }
 0x2bb   :  { %vm962_vm7 = vcmp.eq.f32.partialorder %v937_v47, %v952_v63 }
 0x2bc   :  { %v954_v1 = vpop.xlane.xlu1 %953  ;;  %v970_v0 = vsel %vm962_vm7, %v955_v50, 128.0 }
 0x2bd   :  { %vm963_vm8 = vcmp.eq.f32.partialorder %v938_v49, %v954_v1  ;;  %984 = vmin.xlane.f32.xlu0 %v970_v0 }
 0x2be   :  { %v971_v2 = vsel %vm963_vm8, %v955_v50, 128.0 }
 0x2bf   :  { %986 = vmin.xlane.f32.xlu1 %v971_v2 }
 0x332   :  { %v973_v3 = vpop.xlane.xlu0 %972 }
 0x333   :  { %v989_v4 = vsel %vm988_vm9, %v973_v3, %v1501_v54 }
 0x334   :  { %997 = vst [vmem:[#allocation8] sm:$0xff] %v989_v4 }
 0x336   :  { %v975_v6 = vpop.xlane.xlu1 %974 }
 0x337   :  { %v990_v7 = vsel %vm988_vm9, %v975_v6, %v1508_v57 }
 0x338   :  { %998 = vst [vmem:[#allocation8 + $0x8] sm:$0xff] %v990_v7 }
 0x33a   :  { %v977_v9 = vpop.xlane.xlu0 %976 }
 0x33b   :  { %v991_v10 = vsel %vm988_vm9, %v977_v9, %v1516_v8 }
 0x33c   :  { %999 = vst [vmem:[#allocation8 + $0x10] sm:$0xff] %v991_v10 }
 0x33e   :  { %v979_v11 = vpop.xlane.xlu1 %978 }
 0x33f   :  { %v992_v17 = vsel %vm988_vm9, %v979_v11, %v1521_v16 }
 0x340   :  { %1000 = vst [vmem:[#allocation8 + $0x18] sm:$0xff] %v992_v17 }
 0x342   :  { %v981_v54 = vpop.xlane.xlu0 %980 }
 0x343   :  { %v993_v18 = vsel %vm988_vm9, %v981_v54, %v1528_v30 }
 0x344   :  { %1001 = vst [vmem:[#allocation8 + $0x20] sm:$0xff] %v993_v18  ;;  %v983_v57 = vpop.xlane.xlu1 %982 }
 0x345   :  { %v994_v19 = vsel %vm988_vm9, %v983_v57, %v1533_v32 }
 0x346   :  { %1002 = vst [vmem:[#allocation8 + $0x28] sm:$0xff] %v994_v19 }
 0x34a   :  { %v985_v8 = vpop.xlane.xlu0 %984 }
 0x34b   :  { %v995_v20 = vsel %vm988_vm9, %v985_v8, %v922_v46 }
 0x34c   :  { %1003 = vst [vmem:[#allocation8 + $0x30] sm:$0xff] %v995_v20  ;;  %v987_v16 = vpop.xlane.xlu1 %986 }
 0x34d   :  { %v996_v21 = vsel %vm988_vm9, %v987_v16, %v1542_v48 }
 0x34e   :  { %1004 = vst [vmem:[#allocation8 + $0x38] sm:$0xff] %v996_v21 }
 0x34f   :  { %1344 = shalt.err (!%p1341_p0)
}
 0x350   :  { %s1345_s12 = scalar_lea.hbm %s1590_s5, 1024 }
 0x351   :  { %p1346_p1 = scmp.ne.s32.totalorder %s1590_s5, %s1345_s12  ;;  %p1349_p2 = scmp.lt.u32.totalorder %s1345_s12, %s1590_s5 }
 0x353   :  { %p1351_p3 = pnand %p1349_p2, %p1346_p1 }
 0x355   :  { %1354 = shalt.err (!%p1351_p3)
}
 0x356   :  { %s1370_s1 = smov 128   ;;  %s1371_s17 = smov 8  }
 0x357   :  { %1016 = dma.vmem_to_hbm [thread:$0]  %s1011_s8, 1024, %s1590_s5, [#allocation4], %s1370_s1, %s1370_s1, %s1371_s17  }
 0x358   :  { %1359 = dma.done.wait [#allocation4], 1024  }
 0x359   :  { %1360 = vsyncadd [#allocation4], 4294966272 }
 0x35a   :  { %1020 = vsyncpa [#allocation3], 1 }
 0x35b   :  { %1021 = vsyncpa [#allocation6], 1 }
 0x35c   :  { %1022 = vsyncpa [#allocation4], 1 }

</bundles_post_ra>
